<compile_context>
chip_gen: v7x
topology: tpu7x:2x2x1
jax: 0.10.0
libtpu: 0.0.40
codegen_flags: <defaults>
</compile_context>

<pallas_src>
import functools

import jax
import jax.numpy as jnp
from jax.experimental import pallas as pl
from jax.experimental.pallas import tpu as pltpu

_EPS = 1e-5
_VMEM_LIMIT = 48 * 1024 * 1024   # <= v7x 64 MiB/TC ceiling; plenty of headroom on v5e/v6e


def _round_up(a, b):
    return (a + b - 1) // b * b


def _stats_kernel(x_ref, w_ref, stats_ref, acc_ref):
    """Pass 1: fused 1x1-conv matmul for one M tile; emit only BN partial stats.

    The conv output y never touches HBM -- it is recomputed in pass 2.
    """
    @pl.when(pl.program_id(1) == 0)
    def _():
        acc_ref[...] = jnp.zeros_like(acc_ref)

    # x is already ReLU'd (f32 ReLU fused into the wrapper glue; v5e has no bf16 VPU).
    y = jnp.dot(x_ref[...], w_ref[...], preferred_element_type=jnp.float32)   # MXU, f32 acc

    # Column reductions on the (otherwise nearly idle) MXU instead of the VPU/XLU:
    # an 8-row ones matmul yields 8 identical rows of column sums; keep row 0.
    ones = jnp.ones((8, y.shape[0]), dtype=jnp.float32)
    s1 = jnp.dot(ones, y, preferred_element_type=jnp.float32)[0:1, :]          # sum(y)
    s2 = jnp.dot(ones, y * y, preferred_element_type=jnp.float32)[0:1, :]      # sum(y^2)
    acc_ref[...] += jnp.concatenate([s1, s2], axis=0)      # single (2, C_pad) update

    @pl.when(pl.program_id(1) == pl.num_programs(1) - 1)
    def _():
        stats_ref[...] = acc_ref[...]                       # one store per parallel slice


def _apply_kernel(x_ref, w_ref, scale_ref, shift_ref, o_ref):
    """Pass 2: recompute the fused conv matmul, apply folded BN scale/shift (one FMA/elem)."""
    y = jnp.dot(x_ref[...], w_ref[...], preferred_element_type=jnp.float32)
    o_ref[...] = (y * scale_ref[...] + shift_ref[...]).astype(o_ref.dtype)


def factorized_reduce(x, w1, w2, gamma, beta, *,
                      tile_m=1024, num_parallel=2, matmul_dtype=jnp.bfloat16):
    """x: (N, C_in, H, W) NCHW f32.  w1, w2: (C_out//2, C_in, 1, 1).  gamma, beta: (C_out,).
    Returns (N, C_out, H//2, W//2) NCHW f32."""
    N, C_in, H, W = x.shape
    assert H % 2 == 0 and W % 2 == 0, "even spatial dims required (as in DARTS usage)"
    C_half = w1.shape[0]
    assert w2.shape[0] == C_half and w1.shape[1] == C_in and w2.shape[1] == C_in
    C_out = 2 * C_half
    Ho, Wo = H // 2, W // 2
    M = N * Ho * Wo
    K = 2 * C_in                       # fused contraction dim (both conv inputs)
    C_pad = _round_up(C_out, 128)      # lane-dense output channels

    NC = max(1, int(num_parallel))                           # megacore slices (v7x)
    TM = min(int(tile_m), _round_up(pl.cdiv(M, NC), 16))     # 16: bf16 sublane packing
    M_pad = _round_up(M, NC * TM)
    m_per = M_pad // (NC * TM)                               # inner ("arbitrary") extent
    m_tiles = M_pad // TM

    # ---- glue: ReLU(f32) -> cast -> stride-2 sampling -> channels-last rows ----------
    # conv1 sees pixels (0::2,0::2); conv2 sees x[:, :, 1:, 1:] at stride 2 -> (1::2,1::2).
    # TODO(synk): this repack runs as fused XLA copies outside the kernel; the packed
    # (M, 2*C_in) slab holds only the kept pixels (half of x's elements, half-width dtype),
    # which is cheaper than feeding NHWC x and gathering stride-2 rows in-kernel.
    xr = jnp.maximum(x, 0.0).astype(matmul_dtype)            # ReLU in f32, then narrow
    x12 = jnp.concatenate([xr[:, :, 0::2, 0::2],             # conv1 taps
                           xr[:, :, 1::2, 1::2]], axis=1)    # conv2 taps
    x12 = jnp.transpose(x12, (0, 2, 3, 1)).reshape(M, K)
    if M_pad != M:
        x12 = jnp.pad(x12, ((0, M_pad - M), (0, 0)))         # zero rows: BN-stat neutral

    # Block-diagonal fused weight:  relu([x1 | x2]) @ Wf == [conv1(relu x) | conv2(relu x)].
    w1m = jnp.transpose(w1.reshape(C_half, C_in), (1, 0))
    w2m = jnp.transpose(w2.reshape(C_half, C_in), (1, 0))
    Wf = jnp.zeros((K, C_pad), dtype=matmul_dtype)
    Wf = Wf.at[:C_in, :C_half].set(w1m.astype(matmul_dtype))
    Wf = Wf.at[C_in:, C_half:C_out].set(w2m.astype(matmul_dtype))

    # ---- pass 1: per-channel partial [sum; sumsq] only (no y slab in HBM) ------------
    stats = pl.pallas_call(
        _stats_kernel,
        grid=(NC, m_per),
        in_specs=[
            pl.BlockSpec((TM, K), lambda p, m: (p * m_per + m, 0)),
            pl.BlockSpec((K, C_pad), lambda p, m: (0, 0)),
        ],
        out_specs=pl.BlockSpec((None, 2, C_pad), lambda p, m: (p, 0, 0)),
        out_shape=jax.ShapeDtypeStruct((NC, 2, C_pad), jnp.float32),
        scratch_shapes=[pltpu.VMEM((2, C_pad), jnp.float32)],
        compiler_params=pltpu.CompilerParams(
            dimension_semantics=("parallel", "arbitrary"),
            vmem_limit_bytes=_VMEM_LIMIT),
    )(x12, Wf)

    # ---- BN finalize: tiny C-wide math hoisted out of the kernels --------------------
    # NOTE: var = E[y^2] - E[y]^2 in f32; adequate here, but a centered / Welford-style
    # combine would track PyTorch BN more tightly when |mean| >> std at very large M.
    inv_count = 1.0 / float(M)                               # true M: zero pad rows neutral
    totals = jnp.sum(stats, axis=0)                          # (2, C_pad) combine slices
    mean = totals[0] * inv_count
    var = totals[1] * inv_count - mean * mean
    inv = jax.lax.rsqrt(var + _EPS)
    gamma_p = jnp.zeros((C_pad,), jnp.float32).at[:C_out].set(gamma.astype(jnp.float32))
    beta_p = jnp.zeros((C_pad,), jnp.float32).at[:C_out].set(beta.astype(jnp.float32))
    scale = (gamma_p * inv).reshape(1, C_pad)
    shift = (beta_p - mean * gamma_p * inv).reshape(1, C_pad)

    # ---- pass 2: recompute matmul, apply folded scale/shift (fully parallel) ---------
    out_flat = pl.pallas_call(
        _apply_kernel,
        grid=(m_tiles,),
        in_specs=[
            pl.BlockSpec((TM, K), lambda i: (i, 0)),
            pl.BlockSpec((K, C_pad), lambda i: (0, 0)),
            pl.BlockSpec((1, C_pad), lambda i: (0, 0)),
            pl.BlockSpec((1, C_pad), lambda i: (0, 0)),
        ],
        out_specs=pl.BlockSpec((TM, C_pad), lambda i: (i, 0)),
        out_shape=jax.ShapeDtypeStruct((M_pad, C_pad), jnp.float32),
        compiler_params=pltpu.CompilerParams(
            dimension_semantics=("parallel",),
            vmem_limit_bytes=_VMEM_LIMIT),
    )(x12, Wf, scale, shift)

    # Slice padding and return NCHW (module contract).
    # TODO(synk): a channels-last consumer could take (N, Ho, Wo, C_out) directly and skip
    # this final full-tensor transpose.
    out = out_flat[:M, :C_out].reshape(N, Ho, Wo, C_out)
    return jnp.transpose(out, (0, 3, 1, 2))


def _reference(x, w1, w2, gamma, beta):
    """Pure-JAX reference matching the PyTorch module (training-mode BN)."""
    xr = jnp.maximum(x, 0.0)
    x1 = jnp.transpose(xr[:, :, 0::2, 0::2], (0, 2, 3, 1))
    x2 = jnp.transpose(xr[:, :, 1::2, 1::2], (0, 2, 3, 1))
    C_half, C_in = w1.shape[0], w1.shape[1]
    y1 = x1 @ jnp.transpose(w1.reshape(C_half, C_in), (1, 0))
    y2 = x2 @ jnp.transpose(w2.reshape(C_half, C_in), (1, 0))
    y = jnp.concatenate([y1, y2], axis=-1)                    # NHWC
    mean = jnp.mean(y, axis=(0, 1, 2), keepdims=True)
    var = jnp.mean((y - mean) ** 2, axis=(0, 1, 2), keepdims=True)
    y = (y - mean) * jax.lax.rsqrt(var + _EPS) * gamma + beta
    return jnp.transpose(y, (0, 3, 1, 2))


if __name__ == "__main__":
    # Small shapes consistent with the module: N=2, C_in=4, H=W=16, C_out=8.
    N, C_in, H, W = 2, 4, 16, 16
    C_out = 8

    key = jax.random.PRNGKey(0)
    kx, kw1, kw2 = jax.random.split(key, 3)

    x = jax.random.normal(kx, (N, C_in, H, W), dtype=jnp.float32)
    w1 = jax.random.normal(kw1, (C_out // 2, C_in, 1, 1), dtype=jnp.float32) * 0.5
    w2 = jax.random.normal(kw2, (C_out // 2, C_in, 1, 1), dtype=jnp.float32) * 0.5
    gamma = jnp.ones((C_out,), dtype=jnp.float32)   # BatchNorm2d affine init
    beta = jnp.zeros((C_out,), dtype=jnp.float32)

    # Default (bf16 matmul inputs) path: run once and block.
    out = jax.jit(factorized_reduce)(x, w1, w2, gamma, beta)
    jax.block_until_ready(out)
    assert out.shape == (N, C_out, H // 2, W // 2), out.shape

    # f32 path checked against the pure-JAX reference.
    out_f32 = jax.jit(functools.partial(factorized_reduce, matmul_dtype=jnp.float32))(
        x, w1, w2, gamma, beta)
    ref = _reference(x, w1, w2, gamma, beta)
    jax.block_until_ready((out_f32, ref))
    assert jnp.allclose(out_f32, ref, atol=1e-3, rtol=1e-3), \
        float(jnp.max(jnp.abs(out_f32 - ref)))

    print("KERNEL_OK")
</pallas_src>

<mosaic_0001>
module attributes {stable_mosaic.version = 11 : i64} {
  func.func @_stats_kernel(%arg0: i32, %arg1: i32, %arg2: memref<64x8xbf16, #tpu.memory_space<vmem>>, %arg3: memref<8x128xbf16, #tpu.memory_space<vmem>>, %arg4: memref<1x2x128xf32, #tpu.memory_space<vmem>>, %arg5: memref<2x128xf32, #tpu.memory_space<vmem>>) attributes {dimension_semantics = [#tpu.dimension_semantics<parallel>, #tpu.dimension_semantics<arbitrary>], iteration_bounds = array<i64: 2, 1>, scalar_prefetch = 0 : i64, scratch_operands = 1 : i64, tpu.core_type = #tpu.core_type<tc>, window_params = [{transform_indices = @transform_0, window_bounds = array<i64: 64, 8>}, {pipeline_mode = #tpu.pipeline_mode<synchronous>, transform_indices = @transform_1, window_bounds = array<i64: 8, 128>}, {transform_indices = @transform_2, window_bounds = array<i64: 1, 2, 128>}]} {
    %c0_i32 = arith.constant 0 : i32
    %0 = arith.cmpi eq, %arg1, %c0_i32 : i32
    %1 = arith.extui %0 : i1 to i32
    %c0_i32_0 = arith.constant 0 : i32
    %2 = arith.cmpi ne, %1, %c0_i32_0 : i32
    scf.if %2 {
      %cst_13 = arith.constant 0.000000e+00 : f32
      %19 = vector.broadcast %cst_13 : f32 to vector<2x128xf32>
      %c0_14 = arith.constant 0 : index
      %c0_15 = arith.constant 0 : index
      %20 = vector.load %arg5[%c0_14, %c0_15] : memref<2x128xf32, #tpu.memory_space<vmem>>, vector<2x128xf32>
      tpu.vector_store %arg5[%c0_14, %c0_15], %19 {strides = array<i32>} : memref<2x128xf32, #tpu.memory_space<vmem>>, vector<2x128xf32>,
    } else {
    }
    %c0 = arith.constant 0 : index
    %c0_1 = arith.constant 0 : index
    %3 = vector.load %arg2[%c0, %c0_1] : memref<64x8xbf16, #tpu.memory_space<vmem>>, vector<64x8xbf16>
    %c0_2 = arith.constant 0 : index
    %c0_3 = arith.constant 0 : index
    %4 = vector.load %arg3[%c0_2, %c0_3] : memref<8x128xbf16, #tpu.memory_space<vmem>>, vector<8x128xbf16>
    %cst = arith.constant dense<0.000000e+00> : vector<64x128xf32>
    %5 = tpu.matmul %3, %4, %cst {dimension_numbers = #tpu.dot_dimension_numbers<[1], [0], [0], [1], [0, 0, 1, 1], [], []>} : vector<64x8xbf16>, vector<8x128xbf16>, vector<64x128xf32> -> vector<64x128xf32>
    %cst_4 = arith.constant 1.000000e+00 : f32
    %6 = vector.broadcast %cst_4 : f32 to vector<8x64xf32>
    %cst_5 = arith.constant dense<0.000000e+00> : vector<8x128xf32>
    %7 = tpu.matmul %6, %5, %cst_5 {dimension_numbers = #tpu.dot_dimension_numbers<[1], [0], [0], [1], [0, 0, 1, 1], [], []>} : vector<8x64xf32>, vector<64x128xf32>, vector<8x128xf32> -> vector<8x128xf32>
    %8 = vector.extract_strided_slice %7 {offsets = [0, 0], sizes = [1, 128], strides = [1, 1]} : vector<8x128xf32> to vector<1x128xf32>
    %9 = arith.mulf %5, %5 : vector<64x128xf32>
    %cst_6 = arith.constant dense<0.000000e+00> : vector<8x128xf32>
    %10 = tpu.matmul %6, %9, %cst_6 {dimension_numbers = #tpu.dot_dimension_numbers<[1], [0], [0], [1], [0, 0, 1, 1], [], []>} : vector<8x64xf32>, vector<64x128xf32>, vector<8x128xf32> -> vector<8x128xf32>
    %11 = vector.extract_strided_slice %10 {offsets = [0, 0], sizes = [1, 128], strides = [1, 1]} : vector<8x128xf32> to vector<1x128xf32>
    %c0_7 = arith.constant 0 : index
    %c0_8 = arith.constant 0 : index
    %12 = vector.load %arg5[%c0_7, %c0_8] : memref<2x128xf32, #tpu.memory_space<vmem>>, vector<2x128xf32>
    %13 = tpu.concatenate %8, %11 in 0 : vector<1x128xf32>, vector<1x128xf32> -> vector<2x128xf32>
    %14 = arith.addf %12, %13 : vector<2x128xf32>
    %c0_9 = arith.constant 0 : index
    %c0_10 = arith.constant 0 : index
    %15 = vector.load %arg5[%c0_9, %c0_10] : memref<2x128xf32, #tpu.memory_space<vmem>>, vector<2x128xf32>
    tpu.vector_store %arg5[%c0_9, %c0_10], %14 {strides = array<i32>} : memref<2x128xf32, #tpu.memory_space<vmem>>, vector<2x128xf32>,
    %c0_i32_11 = arith.constant 0 : i32
    %16 = arith.cmpi eq, %arg1, %c0_i32_11 : i32
    %17 = arith.extui %16 : i1 to i32
    %c0_i32_12 = arith.constant 0 : i32
    %18 = arith.cmpi ne, %17, %c0_i32_12 : i32
    scf.if %18 {
      %c0_13 = arith.constant 0 : index
      %c0_14 = arith.constant 0 : index
      %19 = vector.load %arg5[%c0_13, %c0_14] : memref<2x128xf32, #tpu.memory_space<vmem>>, vector<2x128xf32>
      %c0_15 = arith.constant 0 : index
      %c0_16 = arith.constant 0 : index
      %c0_17 = arith.constant 0 : index
      %20 = vector.load %arg4[%c0_15, %c0_16, %c0_17] : memref<1x2x128xf32, #tpu.memory_space<vmem>>, vector<1x2x128xf32>
      %21 = vector.shape_cast %20 : vector<1x2x128xf32> to vector<2x128xf32>
      %22 = vector.shape_cast %19 : vector<2x128xf32> to vector<1x2x128xf32>
      tpu.vector_store %arg4[%c0_15, %c0_16, %c0_17], %22 {strides = array<i32>} : memref<1x2x128xf32, #tpu.memory_space<vmem>>, vector<1x2x128xf32>,
    } else {
    }
    return
  }
  func.func @transform_0(%arg0: i32, %arg1: i32) -> (i32, i32) {
    %c1_i32 = arith.constant 1 : i32
    %0 = arith.muli %arg0, %c1_i32 : i32
    %1 = arith.addi %0, %arg1 : i32
    %c0_i32 = arith.constant 0 : i32
    %c0_i32_0 = arith.constant 0 : i32
    return %1, %c0_i32 : i32, i32
  }
  func.func @transform_1(%arg0: i32, %arg1: i32) -> (i32, i32) {
    %c0_i32 = arith.constant 0 : i32
    %c0_i32_0 = arith.constant 0 : i32
    %c0_i32_1 = arith.constant 0 : i32
    return %c0_i32, %c0_i32_0 : i32, i32
  }
  func.func @transform_2(%arg0: i32, %arg1: i32) -> (i32, i32, i32) {
    %c0_i32 = arith.constant 0 : i32
    %c0_i32_0 = arith.constant 0 : i32
    %c0_i32_1 = arith.constant 0 : i32
    return %arg0, %c0_i32, %c0_i32_0 : i32, i32, i32
  }
}

module attributes {stable_mosaic.version = 11 : i64} {
  func.func @_apply_kernel(%arg0: i32, %arg1: memref<64x8xbf16, #tpu.memory_space<vmem>>, %arg2: memref<8x128xbf16, #tpu.memory_space<vmem>>, %arg3: memref<1x128xf32, #tpu.memory_space<vmem>>, %arg4: memref<1x128xf32, #tpu.memory_space<vmem>>, %arg5: memref<64x128xf32, #tpu.memory_space<vmem>>) attributes {dimension_semantics = [#tpu.dimension_semantics<parallel>], iteration_bounds = array<i64: 2>, scalar_prefetch = 0 : i64, scratch_operands = 0 : i64, tpu.core_type = #tpu.core_type<tc>, window_params = [{transform_indices = @transform_0, window_bounds = array<i64: 64, 8>}, {pipeline_mode = #tpu.pipeline_mode<synchronous>, transform_indices = @transform_1, window_bounds = array<i64: 8, 128>}, {pipeline_mode = #tpu.pipeline_mode<synchronous>, transform_indices = @transform_2, window_bounds = array<i64: 1, 128>}, {pipeline_mode = #tpu.pipeline_mode<synchronous>, transform_indices = @transform_3, window_bounds = array<i64: 1, 128>}, {transform_indices = @transform_4, window_bounds = array<i64: 64, 128>}]} {
    %c0 = arith.constant 0 : index
    %c0_0 = arith.constant 0 : index
    %0 = vector.load %arg1[%c0, %c0_0] : memref<64x8xbf16, #tpu.memory_space<vmem>>, vector<64x8xbf16>
    %c0_1 = arith.constant 0 : index
    %c0_2 = arith.constant 0 : index
    %1 = vector.load %arg2[%c0_1, %c0_2] : memref<8x128xbf16, #tpu.memory_space<vmem>>, vector<8x128xbf16>
    %cst = arith.constant dense<0.000000e+00> : vector<64x128xf32>
    %2 = tpu.matmul %0, %1, %cst {dimension_numbers = #tpu.dot_dimension_numbers<[1], [0], [0], [1], [0, 0, 1, 1], [], []>} : vector<64x8xbf16>, vector<8x128xbf16>, vector<64x128xf32> -> vector<64x128xf32>
    %c0_3 = arith.constant 0 : index
    %c0_4 = arith.constant 0 : index
    %3 = vector.load %arg3[%c0_3, %c0_4] : memref<1x128xf32, #tpu.memory_space<vmem>>, vector<1x128xf32>
    %4 = vector.broadcast %3 : vector<1x128xf32> to vector<64x128xf32>
    %5 = arith.mulf %2, %4 : vector<64x128xf32>
    %c0_5 = arith.constant 0 : index
    %c0_6 = arith.constant 0 : index
    %6 = vector.load %arg4[%c0_5, %c0_6] : memref<1x128xf32, #tpu.memory_space<vmem>>, vector<1x128xf32>
    %7 = vector.broadcast %6 : vector<1x128xf32> to vector<64x128xf32>
    %8 = arith.addf %5, %7 : vector<64x128xf32>
    %c0_7 = arith.constant 0 : index
    %c0_8 = arith.constant 0 : index
    %9 = vector.load %arg5[%c0_7, %c0_8] : memref<64x128xf32, #tpu.memory_space<vmem>>, vector<64x128xf32>
    tpu.vector_store %arg5[%c0_7, %c0_8], %8 {strides = array<i32>} : memref<64x128xf32, #tpu.memory_space<vmem>>, vector<64x128xf32>,
    return
  }
  func.func @transform_0(%arg0: i32) -> (i32, i32) {
    %c0_i32 = arith.constant 0 : i32
    %c0_i32_0 = arith.constant 0 : i32
    return %arg0, %c0_i32 : i32, i32
  }
  func.func @transform_1(%arg0: i32) -> (i32, i32) {
    %c0_i32 = arith.constant 0 : i32
    %c0_i32_0 = arith.constant 0 : i32
    %c0_i32_1 = arith.constant 0 : i32
    return %c0_i32, %c0_i32_0 : i32, i32
  }
  func.func @transform_2(%arg0: i32) -> (i32, i32) {
    %c0_i32 = arith.constant 0 : i32
    %c0_i32_0 = arith.constant 0 : i32
    %c0_i32_1 = arith.constant 0 : i32
    return %c0_i32, %c0_i32_0 : i32, i32
  }
  func.func @transform_3(%arg0: i32) -> (i32, i32) {
    %c0_i32 = arith.constant 0 : i32
    %c0_i32_0 = arith.constant 0 : i32
    %c0_i32_1 = arith.constant 0 : i32
    return %c0_i32, %c0_i32_0 : i32, i32
  }
  func.func @transform_4(%arg0: i32) -> (i32, i32) {
    %c0_i32 = arith.constant 0 : i32
    %c0_i32_0 = arith.constant 0 : i32
    return %arg0, %c0_i32 : i32, i32
  }
}

</mosaic_0001>

<bundles_post_ra>
// kernel: factorized_reduce.3
= control target key start
LH: loop header
LB: loop body
LE: loop exit
PB: predicated region body
PF: predicated region fallthrough
CT: control target
= control target key end

     0   :  { %s492_s15 = smov 0   ;;  %s518_s0 = inlined_call_operand.vmem [shape: bf16[128,8], index: 0, kind: input, shape index: {}]   ;;  %s519_s1 = inlined_call_operand.vmem [shape: bf16[8,128], index: 1, kind: input, shape index: {}]   ;;  %s520_s2 = inlined_call_operand.vmem [shape: f32[1,128], index: 2, kind: input, shape index: {}]   ;;  %s521_s3 = inlined_call_operand.vmem [shape: f32[1,128], index: 3, kind: input, shape index: {}]   ;;  %s522_s4 = inlined_call_operand.vmem [shape: f32[128,128], index: 4, kind: output, shape index: {}]  }
   0x1 LB: > { %s407_s16 = sadd.s32 4294967295, %s465_s15   ;;  %p411_p0 = scmp.ge.s32.totalorder %s465_s15, 1  ;;  %s465_s15 = sphi %s492_s15, %s14_s15  }
   0x2   : > { %p163_p1 = scmp.lt.s32.totalorder %s465_s15, 3 }
   0x4   : > { %p164_p2 = pnand %p411_p0, %p163_p1 }
   0x5   : > { %v210_v0 = vld [vmem:[%s519_s1] sm:$0xf] (!%p164_p2)  ;;  %vm244_vm0 = vcmask (!%p164_p2), 1043456   ;;  %s412_s19 = sshll.u32 (!%p164_p2), %s407_s16, 3  ;;  %vm231_vm1 = vcmask (!%p164_p2), 64512  }
   0x6   : > { %167 = sbr.rel (%p164_p2) target bundleno = 238 (0xee), region = 36  ;;  %445 = vmatprep.subr.msk.bf16.mxu0 (!%p164_p2), %vm244_vm0, %v210_v0  ;;  %446 = vmatprep.subr.msk.bf16.mxu1 (!%p164_p2), %vm244_vm0, %v210_v0  ;;  %v246_v1 = vsel (!%p164_p2), %vm244_vm0, %v210_v0, 0  ;;  %p190_p3 = scmp.lt.s32.totalorder (!%p164_p2), %s412_s19, 15  ;;  %v424_v6 = vld [vmem:[%s520_s2] ss:$0 sm:$0xff] (!%p164_p2) }
   0x7   : > { %434 = vmatpush3.bf16.msra.mxu0 (!%p164_p2), %v246_v1  ;;  %444 = vmatpush3.bf16.msra.mxu1 (!%p164_p2), %v246_v1  ;;  %v425_v8 = vld [vmem:[%s521_s3] ss:$0 sm:$0xff] (!%p164_p2) }
   0xd   : > { %s524_s19 = smov (!%p190_p3, %s412_s19), 15 }
   0xe   : > { %s413_s20 = sshll.u32 %s524_s19, 2  ;;  %s415_s26 = sshll.u32 %s524_s19, 3 }
   0xf   : > { %s193_s23 = scalar_lea.vmem %s518_s0, %s413_s20  ;;  %s199_s5 = scalar_lea.vmem %s522_s4, %s415_s26 }
  0x10   : > { %v455_v2 = vld [vmem:[%s193_s23] sm:$0xff]   ;;  %v456_v3 = vld [vmem:[%s193_s23 + $0x10] sm:$0xff]   ;;  %v457_v4 = vld [vmem:[%s193_s23 + $0x8] sm:$0xff]  }
  0x11   : > { %435 = vmatprep.mubr.msk.bf16.mxu0 %vm231_vm1, %v455_v2  ;;  %439 = vmatprep.mubr.msk.bf16.mxu1 %vm231_vm1, %v456_v3  ;;  %v458_v5 = vld [vmem:[%s193_s23 + $0x18] sm:$0xff]  }
  0x12   : > { %436 = vmatmul.mubr.msk.bf16.vlgmr.msra.gmra.mrb[0].mxu0 %vm231_vm1, %v457_v4  ;;  %440 = vmatmul.mubr.msk.bf16.vlgmr.msra.gmra.mrb[0].mxu1 %vm231_vm1, %v458_v5 }
  0xe5   : > { %v437_v7 = vpop.f32.mrb[0].mxu0  ;;  %v441_v10 = vpop.f32.mrb[0].mxu1 }
  0xe6   : > { %v322_v9 = vmul.f32 %v437_v7, %v424_v6  ;;  %v282_v11 = vpop.f32.mrb[1].mxu0  ;;  %v326_v12 = vmul.f32 %v441_v10, %v424_v6  ;;  %v298_v14 = vpop.f32.mrb[1].mxu1 }
  0xe7   : > { %v320_v13 = vmul.f32 %v424_v6, %v282_v11  ;;  %v438_v15 = vpop.f32.mrb[2].mxu0  ;;  %v324_v17 = vmul.f32 %v424_v6, %v298_v14  ;;  %v442_v19 = vpop.f32.mrb[2].mxu1 }
  0xe8   : > { %v337_v16 = vadd.f32 %v425_v8, %v322_v9  ;;  %v323_v18 = vmul.f32 %v438_v15, %v424_v6  ;;  %v285_v20 = vpop.f32.mrb[3].mxu0  ;;  %v341_v21 = vadd.f32 %v425_v8, %v326_v12  ;;  %v327_v23 = vmul.f32 %v442_v19, %v424_v6  ;;  %v301_v25 = vpop.f32.mrb[3].mxu1 }
  0xe9   : > { %v335_v22 = vadd.f32 %v425_v8, %v320_v13  ;;  %v321_v24 = vmul.f32 %v424_v6, %v285_v20  ;;  %v339_v26 = vadd.f32 %v425_v8, %v324_v17  ;;  %v325_v28 = vmul.f32 %v424_v6, %v301_v25 }
  0xea   : > { %345 = vst [vmem:[%s199_s5 + $0x10] sm:$0xff] %v337_v16  ;;  %v338_v27 = vadd.f32 %v425_v8, %v323_v18  ;;  %349 = vst [vmem:[%s199_s5 + $0x30] sm:$0xff] %v341_v21  ;;  %v342_v29 = vadd.f32 %v425_v8, %v327_v23 }
  0xeb   : > { %343 = vst [vmem:[%s199_s5] sm:$0xff] %v335_v22  ;;  %v336_v30 = vadd.f32 %v425_v8, %v321_v24  ;;  %347 = vst [vmem:[%s199_s5 + $0x20] sm:$0xff] %v339_v26  ;;  %v340_v31 = vadd.f32 %v425_v8, %v325_v28 }
  0xec   : > { %346 = vst [vmem:[%s199_s5 + $0x18] sm:$0xff] %v338_v27  ;;  %350 = vst [vmem:[%s199_s5 + $0x38] sm:$0xff] %v342_v29 }
  0xed   : > { %344 = vst [vmem:[%s199_s5 + $0x8] sm:$0xff] %v336_v30  ;;  %348 = vst [vmem:[%s199_s5 + $0x28] sm:$0xff] %v340_v31 }
  0xee PF: > { %s14_s15 = sadd.s32 1, %s465_s15  }
  0xef   : > { %p11_p4 = scmp.ge.s32.totalorder %s14_s15, 4  }
  0xf1   :  { %13 = sbr.rel (!%p11_p4) target bundleno = 1 (0x1), region = 66 }

// kernel: factorized_reduce.2
= control target key start
LH: loop header
LB: loop body
LE: loop exit
PB: predicated region body
PF: predicated region fallthrough
CT: control target
= control target key end

     0   :  { %s697_s9 = smov 0   ;;  %s699_s10 = smov 0   ;;  %s738_s0 = inlined_call_operand.vmem [shape: bf16[128,8], index: 0, kind: input, shape index: {}]   ;;  %s739_s1 = inlined_call_operand.vmem [shape: bf16[8,128], index: 1, kind: input, shape index: {}]   ;;  %s740_s2 = inlined_call_operand.vmem [shape: f32[2,2,128], index: 2, kind: output, shape index: {}]  }
   0x1   :  { %s701_s11 = smov 0  }
   0x2 LB: > { %s24_s12 = sadd.s32 1, %s672_s10  ;;  %p510_p0 = scmp.ge.s32.totalorder %s676_s11, 1  ;;  %s676_s11 = sphi %s701_s11, %s12_s11   ;;  %s672_s10 = sphi %s699_s10, %s742_s10   ;;  %s668_s9 = sphi %s697_s9, %s741_s9  }
   0x3   : > { %p26_p1 = scmp.ge.s32.totalorder %s24_s12, 2  ;;  %p129_p2 = scmp.lt.s32.totalorder %s676_s11, 3 }
   0x5   : > { %s744_s12 = smov (%p26_p1, %s24_s12), 0  ;;  %p130_p3 = pnand %p510_p0, %p129_p2 }
   0x6   : > { %v177_v0 = vld [vmem:[%s739_s1] sm:$0xf] (!%p130_p3)  ;;  %vm211_vm0 = vcmask (!%p130_p3), 1043456   ;;  %s511_s15 = sshll.u32 (!%p130_p3), %s668_s9, 3  ;;  %vm198_vm1 = vcmask (!%p130_p3), 64512   ;;  %v678_v6 = vmov (!%p130_p3), 0.0|0.0  }
   0x7   : > { %133 = sbr.rel (%p130_p3) target bundleno = 479 (0x1df), region = 28  ;;  %621 = vmatprep.subr.msk.bf16.mxu0 (!%p130_p3), %vm211_vm0, %v177_v0  ;;  %v213_v1 = vsel (!%p130_p3), %vm211_vm0, %v177_v0, 0  ;;  %p153_p4 = scmp.lt.s32.totalorder (!%p130_p3), %s511_s15, 15  ;;  %597 = vmatprep.subr.bf16.mxu1 (!%p130_p3), %v678_v6  ;;  %v679_v7 = vmov (!%p130_p3), 0.0   ;;  %vm680_vm2 = vmmov (!%p130_p3), 0   ;;  %vm280_vm3 = vcmask (!%p130_p3), 523264  }
   0x8   : > { %550 = vmatpush3.bf16.msra.mxu0 (!%p130_p3), %v213_v1  ;;  %168 = vst [vmem:[#allocation2] sm:$0x3] (!%p130_p3), %v679_v7  ;;  %575 = vmatprep.mubr.msk.f32.mxu1 (!%p130_p3), %vm680_vm2, %v679_v7  ;;  %v681_v32 = vmov (!%p130_p3), 1.0   ;;  %p159_p5 = scmp.lt.s32.totalorder (!%p130_p3), %s668_s9, 1  ;;  %vm436_vm4 = vcmask (!%p130_p3), 1040384  }
   0x9   : > { %609 = vmatprep.subr.bf16.mxu0 (!%p130_p3), %v678_v6 }
   0xe   : > { %s746_s15 = smov (!%p153_p4, %s511_s15), 15  ;;  %s748_s9 = smov (!%p159_p5, %s668_s9), 1 }
   0xf   : > { %s512_s16 = sshll.u32 %s746_s15, 2  ;;  %v432_v38 = vld [vmem:[#allocation2] sm:$0x3]  ;;  %s513_s20 = sshll.u32 %s748_s9, 1 }
  0x10   : > { %s156_s19 = scalar_lea.vmem %s738_s0, %s512_s16  ;;  %s162_s23 = scalar_lea.vmem %s740_s2, %s513_s20 }
  0x11   : > { %v650_v2 = vld [vmem:[%s156_s19] sm:$0xff]   ;;  %v651_v3 = vld [vmem:[%s156_s19 + $0x8] sm:$0xff]   ;;  %v652_v4 = vld [vmem:[%s156_s19 + $0x10] sm:$0xff]  }
  0x12   : > { %551 = vmatprep.mubr.msk.bf16.mxu0 %vm198_vm1, %v650_v2  ;;  %v653_v5 = vld [vmem:[%s156_s19 + $0x18] sm:$0xff]  }
  0x13   : > { %552 = vmatmul.mubr.msk.bf16.vlgmr.msra.gmra.mrb[0].mxu0 %vm198_vm1, %v651_v3 }
  0x14   : > { %555 = vmatprep.mubr.msk.bf16.mxu0 %vm198_vm1, %v652_v4 }
  0x1b   : > { %556 = vmatmul.mubr.msk.bf16.gmra.mrb[4].mxu0 %vm198_vm1, %v653_v5 }
  0x1c   : > { %594 = vmatprep.mubr.msk.f32.mxu0 %vm680_vm2, %v679_v7 }
  0xe6   : > { %v553_v8 = vpop.f32.mrb[0].mxu0 }
  0xe7   : > { %v249_v9 = vpop.f32.mrb[1].mxu0  ;;  %v356_v11 = vmul.f32 %v553_v8, %v553_v8 }
  0xe8   : > { %v554_v10 = vpop.f32.mrb[2].mxu0  ;;  %v354_v15 = vmul.f32 %v249_v9, %v249_v9 }
  0xe9   : > { %v601_v12 = vpack.c.bf16 %v554_v10, %v553_v8  ;;  %v357_v13 = vmul.f32 %v554_v10, %v554_v10  ;;  %v252_v14 = vpop.f32.mrb[3].mxu0 }
  0xea   : > { %v355_v16 = vmul.f32 %v252_v14, %v252_v14  ;;  %v598_v17 = vpack.c.bf16 %v252_v14, %v249_v9 }
  0xeb   : > { %v613_v18 = vpack.c.bf16 %v357_v13, %v356_v11 }
  0xec   : > { %v610_v19 = vpack.c.bf16 %v355_v16, %v354_v15  ;;  %599 = vmatpush3.bf16.msra.mxu1 %v598_v17 }
  0xed   : > { %600 = vmatprep.subr.bf16.mxu1 %v678_v6 }
  0xee   : > { %v557_v20 = vpop.f32.mrb[4].mxu0  ;;  %611 = vmatpush3.bf16.msra.mxu0 %v610_v19 }
  0xef   : > { %v265_v21 = vpop.f32.mrb[5].mxu0  ;;  %612 = vmatprep.subr.bf16.mxu0 %v678_v6  ;;  %v360_v23 = vmul.f32 %v557_v20, %v557_v20 }
  0xf0   : > { %v558_v22 = vpop.f32.mrb[6].mxu0  ;;  %602 = vmatpush3.bf16.msra.mxu1 %v601_v12  ;;  %v358_v27 = vmul.f32 %v265_v21, %v265_v21 }
  0xf1   : > { %v607_v24 = vpack.c.bf16 %v558_v22, %v557_v20  ;;  %v361_v25 = vmul.f32 %v558_v22, %v558_v22  ;;  %v268_v26 = vpop.f32.mrb[7].mxu0  ;;  %603 = vmatprep.subr.bf16.mxu1 %v678_v6 }
  0xf2   : > { %v604_v28 = vpack.c.bf16 %v268_v26, %v265_v21  ;;  %v359_v29 = vmul.f32 %v268_v26, %v268_v26  ;;  %614 = vmatpush3.bf16.msra.mxu0 %v613_v18 }
  0xf3   : > { %v619_v30 = vpack.c.bf16 %v361_v25, %v360_v23  ;;  %615 = vmatprep.subr.bf16.mxu0 %v678_v6 }
  0xf4   : > { %v616_v31 = vpack.c.bf16 %v359_v29, %v358_v27  ;;  %605 = vmatpush3.bf16.msra.mxu1 %v604_v28 }
  0xf5   : > { %606 = vmatprep.subr.bf16.mxu1 %v678_v6 }
  0xf6   : > { %617 = vmatpush3.bf16.msra.mxu0 %v616_v31 }
  0xf7   : > { %618 = vmatprep.subr.bf16.mxu0 %v678_v6 }
  0xf8   : > { %608 = vmatpush3.bf16.msra.mxu1 %v607_v24 }
  0xfa   : > { %620 = vmatpush3.bf16.msra.mxu0 %v619_v30 }
  0xfb   : > { %576 = vmatmul.mubr.msk.f32.vlgmr.msra.gmra.mrb[0].mxu1 %vm280_vm3, %v681_v32 }
  0xfd   : > { %595 = vmatmul.mubr.msk.f32.vlgmr.msra.gmra.mrb[8].mxu0 %vm280_vm3, %v681_v32 }
 0x1ce   : > { %v350_v33 = vpop.f32.mrb[0].mxu1 }
 0x1cf   : > { %v577_v34 = vpop.f32.mrb[1].mxu1 }
 0x1d0   : > { %v428_v35 = vpop.f32.mrb[8].mxu0 }
 0x1d1   : > { %v434_v36 = vrot.slane %v428_v35, 7  ;;  %v596_v37 = vpop.f32.mrb[9].mxu0 }
 0x1d3   : > { %v437_v39 = vsel %vm436_vm4, %v350_v33, %v434_v36 }
 0x1d4   : > { %v438_v40 = vadd.f32 %v437_v39, %v432_v38 }
 0x1d6   : > { %439 = vst [vmem:[#allocation2] sm:$0x3] %v438_v40 }
 0x1dd   : > { %v443_v41 = vld [vmem:[#allocation2] sm:$0x3] }
 0x1de   : > { %444 = vst [vmem:[%s162_s23] sm:$0x3] %v443_v41 }
 0x1df PF: > { %s12_s11 = sadd.s32 1, %s676_s11   ;;  %s741_s9 = smov %s672_s10 }
 0x1e0   : > { %p9_p6 = scmp.ge.s32.totalorder %s12_s11, 4   ;;  %s742_s10 = smov %s744_s12 }
 0x1e2   :  { %11 = sbr.rel (!%p9_p6) target bundleno = 2 (0x2), region = 66 }

</bundles_post_ra>
